<compile_context>
chip_gen: v7x
topology: tpu7x:2x2x1
jax: 0.10.0
libtpu: 0.0.40
codegen_flags: <defaults>
</compile_context>

<pallas_src>
import jax
import jax.numpy as jnp
import numpy as np
from jax import lax
from jax.experimental import pallas as pl
from jax.experimental.pallas import tpu as pltpu

BLANK = 28
# 28 real symbols + blank token at index 28  ->  29 classes total
LABELS = list("abcdefghijklmnopqrstuvwxyz' ") + ["-"]
NUM_CLASSES = len(LABELS)  # 29


def _greedy_ctc_kernel(prev_idx_ref, em_ref, out_ref):
    """prev_idx_ref: (num_tiles,) int32 SMEM  argmax of the time step just
                     before each tile (-1 for tile 0 = "start of a run")
       em_ref:       (C, TILE_T)              emission block (classes x time)
       out_ref:      (1, TILE_T) int32        argmax class if it survives the
                     unique_consecutive collapse AND is not blank, else -1
    """
    em = em_ref[...].astype(jnp.float32)                    # (C, TT)
    C, TT = em.shape

    # argmax over the class (sublane) axis, first-index tie-break (matches
    # torch.argmax / jnp.argmax).
    # TODO(synk): NaN emissions fall through to class C here (torch.argmax
    # would return the NaN position); not handled.
    max_v = jnp.max(em, axis=0, keepdims=True)              # (1, TT)  XLU
    cls = lax.broadcasted_iota(jnp.int32, (C, TT), 0)
    idx = jnp.min(jnp.where(em == max_v, cls, C), axis=0, keepdims=True)
    idx = idx.astype(jnp.int32)                             # (1, TT)

    # unique_consecutive + blank filter: keep t iff idx[t] != idx[t-1] and
    # idx[t] != blank.  idx[t-1] for lane 0 comes from the prefetched
    # per-tile boundary value, so tiles are independent ("parallel" grid).
    prev = pltpu.roll(idx, shift=1, axis=1)                 # idx[t-1] (wraps)
    lane = lax.broadcasted_iota(jnp.int32, (1, TT), 1)
    prev = jnp.where(lane == 0, prev_idx_ref[pl.program_id(0)], prev)
    keep = (idx != prev) & (idx != BLANK)
    out_ref[...] = jnp.where(keep, idx, -1)


def _round_up(x: int, m: int) -> int:
    return ((x + m - 1) // m) * m


def greedy_ctc_decode(emission: jax.Array, labels=LABELS, blank: int = BLANK,
                      tile_t: int = 8192) -> str:
    """emission: (T, C) float array (f32 or bf16). Returns the decoded string."""
    assert emission.ndim == 2
    T, C = emission.shape
    assert C == NUM_CLASSES and blank == BLANK

    # tile width on the time/lane axis: multiple of 128, no larger than needed
    tile_t = max(128, (min(tile_t, _round_up(T, 128)) // 128) * 128)
    num_tiles = -(-T // tile_t)
    t_pad = num_tiles * tile_t

    # classes -> sublanes, time -> lanes; pad time out to the tile grid
    # (padded tail is sliced off host-side, it never influences real steps).
    em_t = jnp.transpose(emission)                          # (C, T)
    if t_pad != T:
        em_t = jnp.pad(em_t, ((0, 0), (0, t_pad - T)))

    # argmax of the time step immediately before each tile (tile 0 -> -1),
    # delivered via scalar prefetch so the grid axis needs no sequential carry.
    prev_idx = jnp.full((num_tiles,), -1, dtype=jnp.int32)
    if num_tiles > 1:
        boundary = jnp.arange(1, num_tiles) * tile_t - 1    # all < T
        prev_idx = prev_idx.at[1:].set(
            jnp.argmax(emission[boundary].astype(jnp.float32), axis=-1)
            .astype(jnp.int32))

    packed = pl.pallas_call(
        _greedy_ctc_kernel,
        out_shape=jax.ShapeDtypeStruct((1, t_pad), jnp.int32),
        grid_spec=pltpu.PrefetchScalarGridSpec(
            num_scalar_prefetch=1,
            grid=(num_tiles,),
            in_specs=[pl.BlockSpec((C, tile_t), lambda i, prev: (0, i))],
            out_specs=pl.BlockSpec((1, tile_t), lambda i, prev: (0, i)),
        ),
        compiler_params=pltpu.CompilerParams(
            dimension_semantics=("parallel",)),
    )(prev_idx, em_t)

    jax.block_until_ready(packed)

    # host-side glue: variable-length gather + string join (no array analog)
    vals = np.asarray(packed)[0, :T]
    return "".join(labels[int(v)] for v in vals if v >= 0)


def _ref_decode(emission) -> str:
    """Plain-numpy reference with the same semantics as the torch module."""
    e = np.asarray(jnp.asarray(emission).astype(jnp.float32))
    idx = np.argmax(e, axis=-1)
    collapsed = [int(idx[t]) for t in range(len(idx))
                 if t == 0 or idx[t] != idx[t - 1]]
    return "".join(LABELS[i] for i in collapsed if i != BLANK)


if __name__ == "__main__":
    key = jax.random.PRNGKey(0)
    k1, k2, k3, k4 = jax.random.split(key, 4)

    # Test 1: tiny utterance, f32, single (clamped) tile.
    T1 = 8
    em1 = jax.random.normal(k1, (T1, NUM_CLASSES), dtype=jnp.float32)
    out1 = greedy_ctc_decode(em1)
    assert out1 == _ref_decode(em1), (out1, _ref_decode(em1))

    # Test 2: longer bf16 utterance with repeated classes and blanks, forced
    # multi-tile (tile_t=128 -> 3 tiles) to exercise the cross-tile prev carry
    # and the non-multiple-of-128 time padding.
    runs = jax.random.randint(k2, (30,), 0, 4)
    cls = jnp.repeat(runs, 10)                       # length 300, runs of 10
    cls = jnp.where(cls == 3, BLANK, cls)            # inject blank runs
    em2 = (4.0 * jax.nn.one_hot(cls, NUM_CLASSES)
           + 0.1 * jax.random.normal(k3, (300, NUM_CLASSES))
           ).astype(jnp.bfloat16)
    out2 = greedy_ctc_decode(em2, tile_t=128)
    assert out2 == _ref_decode(em2), (out2, _ref_decode(em2))

    # Test 3: medium f32 utterance with the default tile size (exercises the
    # tile-clamping path: tile_t=8192 -> clamped to 1536, single tile).
    T3 = 1500
    em3 = jax.random.normal(k4, (T3, NUM_CLASSES), dtype=jnp.float32)
    out3 = greedy_ctc_decode(em3)
    assert out3 == _ref_decode(em3), (out3, _ref_decode(em3))

    print("KERNEL_OK")
</pallas_src>

<mosaic_0001>
module attributes {stable_mosaic.version = 11 : i64} {
  func.func @_greedy_ctc_kernel(%arg0: i32, %arg1: memref<1xi32, #tpu.memory_space<smem>>, %arg2: memref<29x128xf32, #tpu.memory_space<vmem>>, %arg3: memref<1x128xi32, #tpu.memory_space<vmem>>) attributes {dimension_semantics = [#tpu.dimension_semantics<parallel>], iteration_bounds = array<i64: 1>, scalar_prefetch = 1 : i64, scratch_operands = 0 : i64, tpu.core_type = #tpu.core_type<tc>, window_params = [{transform_indices = @transform_0, window_bounds = array<i64: 29, 128>}, {transform_indices = @transform_1, window_bounds = array<i64: 1, 128>}]} {
    %c0 = arith.constant 0 : index
    %c0_0 = arith.constant 0 : index
    %0 = vector.load %arg2[%c0, %c0_0] : memref<29x128xf32, #tpu.memory_space<vmem>>, vector<29x128xf32>
    %cst = arith.constant dense<0xFF800000> : vector<128xf32>
    %1 = vector.multi_reduction <maximumf>, %0, %cst [0] : vector<29x128xf32> to vector<128xf32>
    %2 = vector.shape_cast %1 : vector<128xf32> to vector<1x128xf32>
    %3 = tpu.iota {dimensions = array<i32: 0>} : vector<29x128xi32>
    %4 = vector.broadcast %2 : vector<1x128xf32> to vector<29x128xf32>
    %5 = arith.cmpf oeq, %0, %4 : vector<29x128xf32>
    %c29_i32 = arith.constant 29 : i32
    %6 = vector.broadcast %c29_i32 : i32 to vector<29x128xi32>
    %7 = arith.select %5, %3, %6 : vector<29x128xi1>, vector<29x128xi32>
    %cst_1 = arith.constant dense<2147483647> : vector<128xi32>
    %8 = vector.multi_reduction <minsi>, %7, %cst_1 [0] : vector<29x128xi32> to vector<128xi32>
    %9 = vector.shape_cast %8 : vector<128xi32> to vector<1x128xi32>
    %c1_i32 = arith.constant 1 : i32
    %10 = tpu.dynamic_rotate %9 by %c1_i32 dim 1 : vector<1x128xi32>, i32 -> vector<1x128xi32>
    %11 = tpu.iota {dimensions = array<i32: 1>} : vector<1x128xi32>
    %c0_i32 = arith.constant 0 : i32
    %12 = vector.broadcast %c0_i32 : i32 to vector<1x128xi32>
    %13 = arith.cmpi eq, %11, %12 : vector<1x128xi32>
    %14 = arith.index_cast %arg0 : i32 to index
    %15 = memref.load %arg1[%14] : memref<1xi32, #tpu.memory_space<smem>>
    %16 = vector.broadcast %15 : i32 to vector<1x128xi32>
    %17 = arith.select %13, %16, %10 : vector<1x128xi1>, vector<1x128xi32>
    %18 = arith.cmpi ne, %9, %17 : vector<1x128xi32>
    %c28_i32 = arith.constant 28 : i32
    %19 = vector.broadcast %c28_i32 : i32 to vector<1x128xi32>
    %20 = arith.cmpi ne, %9, %19 : vector<1x128xi32>
    %21 = arith.andi %18, %20 : vector<1x128xi1>
    %c-1_i32 = arith.constant -1 : i32
    %22 = vector.broadcast %c-1_i32 : i32 to vector<1x128xi32>
    %23 = arith.select %21, %9, %22 : vector<1x128xi1>, vector<1x128xi32>
    %c0_2 = arith.constant 0 : index
    %c0_3 = arith.constant 0 : index
    %24 = vector.load %arg3[%c0_2, %c0_3] : memref<1x128xi32, #tpu.memory_space<vmem>>, vector<1x128xi32>
    tpu.vector_store %arg3[%c0_2, %c0_3], %23 {strides = array<i32>} : memref<1x128xi32, #tpu.memory_space<vmem>>, vector<1x128xi32>,
    return
  }
  func.func @transform_0(%arg0: i32, %arg1: memref<1xi32, #tpu.memory_space<smem>>) -> (i32, i32) {
    %c0_i32 = arith.constant 0 : i32
    %c0_i32_0 = arith.constant 0 : i32
    return %c0_i32, %arg0 : i32, i32
  }
  func.func @transform_1(%arg0: i32, %arg1: memref<1xi32, #tpu.memory_space<smem>>) -> (i32, i32) {
    %c0_i32 = arith.constant 0 : i32
    %c0_i32_0 = arith.constant 0 : i32
    return %c0_i32, %arg0 : i32, i32
  }
}

</mosaic_0001>

<bundles_post_ra>
// kernel: tpu_custom_call.1
= control target key start
LH: loop header
LB: loop body
LE: loop exit
PB: predicated region body
PF: predicated region fallthrough
CT: control target
= control target key end

     0   :  { %8 = vsyncpa [#allocation5], 0  ;;  %s199_s0 = inlined_call_operand.<no memory space> [shape: s32[1], index: 0, kind: input, shape index: {}]   ;;  %s200_s1 = inlined_call_operand.hbm [shape: f32[29,128], index: 1, kind: input, shape index: {}]   ;;  %s201_s2 = inlined_call_operand.hbm [shape: s32[1,128], index: 2, kind: output, shape index: {}]  }
   0x1   :  { %9 = vsyncpa [#allocation6], 0  ;;  %s150_s9 = smov [#allocation4]   ;;  %s102_s13 = scalar_lea.hbm %s200_s1, 512 }
   0x2   :  { %s15_s10 = sshll.u32 %s150_s9, 4  ;;  %p103_p0 = scmp.ne.s32.totalorder %s200_s1, %s102_s13  ;;  %s16_s10 = int_to_ptr.vmem [resolvable:$true] %s15_s10 }
   0x3   :  { %p106_p1 = scmp.lt.u32.totalorder %s102_s13, %s200_s1 }
   0x5   :  { %p108_p2 = pnand %p106_p1, %p103_p0 }
   0x7   :  { %111 = shalt.err (!%p108_p2)
}
   0x8   :  { %s112_s18 = scalar_lea.vmem %s16_s10, 512  ;;  %p117_p4 = scmp.lt.s32.totalorder %s16_s10, %s16_s10 }
   0x9   :  { %p113_p3 = scmp.ne.s32.totalorder %s16_s10, %s112_s18  ;;  %p118_p5 = scmp.lt.s32.totalorder %s112_s18, %s112_s18 }
   0xb   :  { %p119_p6 = por %p118_p5, %p117_p4 }
   0xd   :  { %p120_p7 = pnand %p119_p6, %p113_p3 }
   0xf   :  { %123 = shalt.err (!%p120_p7)
}
  0x10   :  { %s151_s19 = smov 128   ;;  %s152_s20 = smov 8  }
  0x11   :  { %21 = dma.hbm_to_vmem [thread:$0]  %s200_s1, 512, %s16_s10, [#allocation5], %s151_s19, %s151_s19, %s152_s20  }
  0x12   :  { %146 = dma.done.wait [#allocation5], 512  }
  0x13   :  { %147 = vsyncadd [#allocation5], 4294966784  ;;  %vm29_vm0 = vcmask 1044480   ;;  %v25_v0 = vld [vmem:[#allocation4] sm:$0xff]  ;;  %v26_v1 = vld [vmem:[#allocation4 + $0x8] sm:$0xff]  ;;  %v40_v9 = vlaneseq  ;;  %s153_s1 = smov 1   ;;  %v75_v34 = vstv %s199_s0 }
  0x14   :  { %v27_v2 = vld [vmem:[#allocation4 + $0x10] sm:$0xff]  ;;  %v28_v3 = vld [vmem:[#allocation4 + $0x18] sm:$0x1f]  ;;  %v31_v4 = vmax.f32 %v25_v0, %v26_v1  ;;  %s154_s25 = smov [#allocation7]  }
  0x15   :  { %v30_v5 = vsel %vm29_vm0, %v28_v3, -inf  ;;  %v41_v12 = vshrl.u32 %v40_v9, 7  ;;  %v72_v33 = vand.u32 127, %v40_v9  ;;  %s88_s26 = sshll.u32 %s154_s25, 4  ;;  %s89_s26 = int_to_ptr.vmem [resolvable:$true] %s88_s26 }
  0x16   :  { %v32_v6 = vmax.f32 %v27_v2, %v30_v5  ;;  %s124_s27 = scalar_lea.vmem %s89_s26, 16  ;;  %s128_s28 = scalar_lea.vmem %s89_s26, 32 }
  0x17   :  { %v42_v15 = vadd.s32 8, %v41_v12  ;;  %v43_v16 = vadd.s32 16, %v41_v12  ;;  %v44_v17 = vadd.s32 24, %v41_v12  ;;  %vm73_vm11 = vcmp.eq.s32.totalorder %v72_v33, 0  ;;  %p125_p8 = scmp.ne.s32.totalorder %s89_s26, %s124_s27  ;;  %p129_p9 = scmp.lt.s32.totalorder %s89_s26, %s89_s26 }
  0x18   :  { %v33_v7 = vmax.f32 %v31_v4, %v32_v6  ;;  %p130_p10 = scmp.lt.s32.totalorder %s128_s28, %s124_s27 }
  0x1a   :  { %v34_v8 = vrot.slane %v33_v7, 4  ;;  %p131_p11 = por %p130_p10, %p129_p9 }
  0x1c   :  { %v35_v10 = vmax.f32 %v33_v7, %v34_v8  ;;  %p132_p12 = pnand %p131_p11, %p125_p8 }
  0x1e   :  { %v36_v11 = vrot.slane %v35_v10, 2 }
  0x20   :  { %v37_v13 = vmax.f32 %v35_v10, %v36_v11 }
  0x22   :  { %v38_v14 = vrot.slane %v37_v13, 1 }
  0x24   :  { %v39_v18 = vmax.f32 %v37_v13, %v38_v14 }
  0x26   :  { %vm45_vm1 = vcmp.eq.f32.partialorder %v25_v0, %v39_v18  ;;  %vm46_vm2 = vcmp.eq.f32.partialorder %v26_v1, %v39_v18  ;;  %vm47_vm3 = vcmp.eq.f32.partialorder %v27_v2, %v39_v18  ;;  %vm48_vm4 = vcmp.eq.f32.partialorder %v28_v3, %v39_v18 }
  0x27   :  { %v49_v19 = vsel %vm45_vm1, %v41_v12, 29  ;;  %v50_v20 = vsel %vm46_vm2, %v42_v15, 29  ;;  %v51_v21 = vsel %vm47_vm3, %v43_v16, 29  ;;  %v52_v22 = vsel %vm48_vm4, %v44_v17, 29 }
  0x28   :  { %v53_v23 = vsel %vm29_vm0, %v52_v22, 2147483647  ;;  %vm54_vm5 = vcmp.lt.s32.totalorder %v49_v19, %v50_v20 }
  0x29   :  { %v55_v24 = vsel %vm54_vm5, %v49_v19, %v50_v20  ;;  %vm56_vm6 = vcmp.lt.s32.totalorder %v51_v21, %v53_v23 }
  0x2a   :  { %v57_v25 = vsel %vm56_vm6, %v51_v21, %v53_v23 }
  0x2b   :  { %vm58_vm7 = vcmp.lt.s32.totalorder %v55_v24, %v57_v25 }
  0x2c   :  { %v59_v26 = vsel %vm58_vm7, %v55_v24, %v57_v25 }
  0x2d   :  { %v60_v27 = vrot.slane %v59_v26, 4 }
  0x2f   :  { %vm61_vm8 = vcmp.lt.s32.totalorder %v59_v26, %v60_v27 }
  0x30   :  { %v62_v28 = vsel %vm61_vm8, %v59_v26, %v60_v27 }
  0x31   :  { %v63_v29 = vrot.slane %v62_v28, 2 }
  0x33   :  { %vm64_vm9 = vcmp.lt.s32.totalorder %v62_v28, %v63_v29 }
  0x34   :  { %v65_v30 = vsel %vm64_vm9, %v62_v28, %v63_v29 }
  0x35   :  { %v66_v31 = vrot.slane %v65_v30, 1 }
  0x37   :  { %vm67_vm10 = vcmp.lt.s32.totalorder %v65_v30, %v66_v31 }
  0x38   :  { %v68_v32 = vsel %vm67_vm10, %v65_v30, %v66_v31 }
  0x39   :  { %69 = vrot.lane.b32.xlu0 %v68_v32, %s153_s1  ;;  %vm78_vm12 = vcmp.ne.s32.totalorder %v68_v32, 28 }
  0xab   :  { %v70_v35 = vpop.permute.xlu0 %69 }
  0xac   :  { %v76_v36 = vsel %vm73_vm11, %v75_v34, %v70_v35 }
  0xad   :  { %vm77_vm13 = vcmp.ne.s32.totalorder %v68_v32, %v76_v36 }
  0xae   :  { %vm79_vm14 = vmand %vm77_vm13, %vm78_vm12 }
  0xaf   :  { %v80_v37 = vsel %vm79_vm14, %v68_v32, 4294967295 }
  0xb0   :  { %81 = vst [vmem:[#allocation7] sm:$0x1] %v80_v37 }
  0xb1   :  { %135 = shalt.err (!%p132_p12)
}
  0xb2   :  { %s136_s30 = scalar_lea.hbm %s201_s2, 16 }
  0xb3   :  { %p137_p13 = scmp.ne.s32.totalorder %s201_s2, %s136_s30  ;;  %p140_p0 = scmp.lt.u32.totalorder %s136_s30, %s201_s2 }
  0xb5   :  { %p142_p1 = pnand %p140_p0, %p137_p13 }
  0xb7   :  { %145 = shalt.err (!%p142_p1)
}
  0xb8   :  { %91 = dma.vmem_to_hbm [thread:$0]  %s89_s26, 16, %s201_s2, [#allocation6]  }
  0xb9   :  { %148 = dma.done.wait [#allocation6], 16  }
  0xba   :  { %149 = vsyncadd [#allocation6], 4294967280 }
  0xbb   :  { %95 = vsyncpa [#allocation5], 1 }
  0xbc   :  { %96 = vsyncpa [#allocation6], 1 }

</bundles_post_ra>
